<compile_context>
chip_gen: v7x
topology: tpu7x:2x2x1
jax: 0.10.0
libtpu: 0.0.40
codegen_flags: <defaults>
</compile_context>

<pallas_src>
import functools

import numpy as np
import jax
import jax.numpy as jnp
from jax.experimental import pallas as pl
from jax.experimental.pallas import tpu as pltpu

F32 = jnp.float32
BF16 = jnp.bfloat16
_HIGHEST = jax.lax.Precision.HIGHEST   # only used by the pure-JAX reference


# ----------------------------- fused Pallas kernel -----------------------------

def _bottleneck_kernel(x_ref, s1_ref, b1_ref, w1_ref, s2_ref, b2_ref,
                       m_ref, sbig_ref, s3_ref, b3_ref, w3_ref, *rest, proj):
    """Whole bottleneck block for a B_tile-image slab, rows = B*H, lanes = W*C."""
    if proj:
        wsc_ref, o_ref = rest
    else:
        (o_ref,) = rest

    x = x_ref[...]                                   # (B*H, W*Cin) bf16
    xf = x.astype(jnp.float32)

    # ---- stage 1: conv1(relu(bn1(x))) then relu(bn2(.)) ----
    a0 = jnp.maximum(xf * s1_ref[...] + b1_ref[...], 0.0)
    a1 = jnp.dot(a0.astype(BF16), w1_ref[...],
                 preferred_element_type=jnp.float32)                 # (B*H, W*Cmid)
    a1 = jnp.maximum(a1 * s2_ref[...] + b2_ref[...], 0.0).astype(BF16)

    # TODO(synk): nn.Dropout instantiated with use_dropout=False (Identity);
    # training-mode dropout masking is not implemented.

    # ---- stage 2: 3x3 conv (pad=1, stride).  H-tap/stride/pad via the per-image
    #      block-diagonal selection S_big[dh]; W-tap/stride/pad + channel mixing are
    #      folded into the banded matrix m[dh]. ----
    acc = jnp.zeros((o_ref.shape[0], m_ref.shape[2]), jnp.float32)   # (B*Ho, Wo*Cmid)
    for dh in range(3):                                              # unrolled at trace
        rows = jnp.dot(sbig_ref[dh], a1,
                       preferred_element_type=jnp.float32).astype(BF16)
        acc = acc + jnp.dot(rows, m_ref[dh], preferred_element_type=jnp.float32)

    # ---- stage 3: conv3(relu(bn3(.))) + shortcut ----
    h = jnp.maximum(acc * s3_ref[...] + b3_ref[...], 0.0).astype(BF16)
    out = jnp.dot(h, w3_ref[...], preferred_element_type=jnp.float32)  # (B*Ho, Wo*Cout)

    if proj:
        # strided 1x1 projection shortcut: H-stride via S_big[1] row selection,
        # W-stride + channel projection folded into wsc_big.
        xs = jnp.dot(sbig_ref[1], x,
                     preferred_element_type=jnp.float32).astype(BF16)
        out = out + jnp.dot(xs, wsc_ref[...], preferred_element_type=jnp.float32)
    else:
        out = out + xf                                               # identity shortcut

    o_ref[...] = out.astype(o_ref.dtype)                             # lane-dense bf16 store


# ----------------------------- one-time parameter packing -----------------------------

def _pick_b_tile(n, h):
    """Largest divisor of n keeping the slab at <= 512 rows (MXU M-fill vs VMEM)."""
    best = 1
    for bt in range(1, n + 1):
        if n % bt == 0 and bt * h <= 512:
            best = bt
    return best


def pack_params(p, *, H, W, stride, b_tile):
    """Fold all layout / conv-structure work into constant matrices, once."""
    Cin, Cmid = p["w1"].shape
    Cout = p["w3"].shape[1]
    s = stride
    Ho = (H - 1) // s + 1
    Wo = (W - 1) // s + 1
    same_shape = (Cin == Cout) and (s == 1)

    packed = dict(
        s1=jnp.tile(p["s1"], (1, W)),  b1=jnp.tile(p["b1"], (1, W)),
        s2=jnp.tile(p["s2"], (1, W)),  b2=jnp.tile(p["b2"], (1, W)),
        s3=jnp.tile(p["s3"], (1, Wo)), b3=jnp.tile(p["b3"], (1, Wo)),
        w1_big=jnp.kron(jnp.eye(W, dtype=F32), p["w1"]).astype(BF16),    # (W*Cin, W*Cmid)
        w3_big=jnp.kron(jnp.eye(Wo, dtype=F32), p["w3"]).astype(BF16),   # (Wo*Cmid, Wo*Cout)
    )

    # W-tap / W-stride / W-pad selection folded with the 3x3 weights.
    q = np.zeros((3, W, Wo), np.float32)
    for dj in range(3):
        for wo in range(Wo):
            w_in = s * wo + dj - 1
            if 0 <= w_in < W:
                q[dj, w_in, wo] = 1.0
    packed["m"] = jnp.stack([
        sum(jnp.kron(jnp.asarray(q[dj]), p["w2"][dh, dj]) for dj in range(3))
        for dh in range(3)
    ]).astype(BF16)                                                      # (3, W*Cmid, Wo*Cmid)

    # H-tap / H-stride / H-pad selection, block-diagonal over the B_tile images that
    # are folded into the matmul M dimension.
    sblk = np.zeros((3, Ho, H), np.float32)
    for dh in range(3):
        for ho in range(Ho):
            h_in = s * ho + dh - 1
            if 0 <= h_in < H:
                sblk[dh, ho, h_in] = 1.0
    sbig = np.zeros((3, b_tile * Ho, b_tile * H), np.float32)
    for b in range(b_tile):
        sbig[:, b * Ho:(b + 1) * Ho, b * H:(b + 1) * H] = sblk
    packed["s_big"] = jnp.asarray(sbig, BF16)                            # (3, B*Ho, B*H)

    if not same_shape:
        qsc = np.zeros((W, Wo), np.float32)                              # shortcut W-stride
        for wo in range(Wo):
            qsc[s * wo, wo] = 1.0
        packed["wsc_big"] = jnp.kron(jnp.asarray(qsc), p["wsc"]).astype(BF16)  # (W*Cin, Wo*Cout)

    return packed


# ----------------------------- hot-path forward -----------------------------

def _rep_spec(shape):
    """BlockSpec for a fully VMEM-resident array (same block every grid step)."""
    zeros = (0,) * len(shape)
    return pl.BlockSpec(shape, lambda n, _z=zeros: _z)


@jax.jit
def bottleneck_forward(x_lane, packed):
    """Lane-dense forward: x_lane is bf16 (N*H, W*Cin); returns bf16 (N*Ho, Wo*Cout)."""
    NH, WCin = x_lane.shape
    _, BHo, BH = packed["s_big"].shape              # B_tile*Ho, B_tile*H
    WCmid = packed["w1_big"].shape[1]
    WoCmid, WoCout = packed["w3_big"].shape
    assert NH % BH == 0
    grid = NH // BH
    proj = "wsc_big" in packed

    args = [x_lane, packed["s1"], packed["b1"], packed["w1_big"],
            packed["s2"], packed["b2"], packed["m"], packed["s_big"],
            packed["s3"], packed["b3"], packed["w3_big"]]
    in_specs = [
        pl.BlockSpec((BH, WCin), lambda n: (n, 0)),
        _rep_spec((1, WCin)), _rep_spec((1, WCin)),
        _rep_spec((WCin, WCmid)),
        _rep_spec((1, WCmid)), _rep_spec((1, WCmid)),
        _rep_spec((3, WCmid, WoCmid)),
        _rep_spec((3, BHo, BH)),
        _rep_spec((1, WoCmid)), _rep_spec((1, WoCmid)),
        _rep_spec((WoCmid, WoCout)),
    ]
    if proj:
        args.append(packed["wsc_big"])
        in_specs.append(_rep_spec((WCin, WoCout)))

    return pl.pallas_call(
        functools.partial(_bottleneck_kernel, proj=proj),
        out_shape=jax.ShapeDtypeStruct((grid * BHo, WoCout), BF16),
        grid_spec=pltpu.PrefetchScalarGridSpec(
            num_scalar_prefetch=0,
            grid=(grid,),
            in_specs=in_specs,
            out_specs=pl.BlockSpec((BHo, WoCout), lambda n: (n, 0)),
        ),
        compiler_params=pltpu.CompilerParams(
            dimension_semantics=("parallel",),
            vmem_limit_bytes=32 * 1024 * 1024,     # ample for these shapes on all gens
        ),
    )(*args)


# ----------------------------- layout helpers (test/setup only) -----------------------------

def to_lane_dense(x_nchw):
    """NCHW -> lane-dense (N*H, W*C) bf16.  One-time conversion outside the hot path."""
    N, C, H, W = x_nchw.shape
    return jnp.transpose(x_nchw, (0, 2, 3, 1)).reshape(N * H, W * C).astype(BF16)


def from_lane_dense(y_lane, N, Ho, Wo, Cout):
    """Lane-dense (N*Ho, Wo*Cout) -> NCHW, for comparison with the reference."""
    return jnp.transpose(y_lane.reshape(N, Ho, Wo, Cout), (0, 3, 1, 2))


# ----------------------------- parameters -----------------------------

def init_params(key, in_c, out_c):
    """Deterministic synthetic parameters (use_bn=True, inference-mode BN fold)."""
    mid = out_c // 4
    eps = 1e-5
    ks = jax.random.split(key, 16)

    def bn_fold(kg, kb, km, kv, c):
        gamma = jax.random.uniform(kg, (c,), F32, 0.5, 1.5)
        beta = 0.1 * jax.random.normal(kb, (c,), F32)
        mean = 0.1 * jax.random.normal(km, (c,), F32)
        var = jax.random.uniform(kv, (c,), F32, 0.5, 1.5)
        scale = gamma / jnp.sqrt(var + eps)
        bias = beta - mean * scale
        return scale.reshape(1, c), bias.reshape(1, c)

    s1, b1 = bn_fold(ks[0], ks[1], ks[2], ks[3], in_c)
    s2, b2 = bn_fold(ks[4], ks[5], ks[6], ks[7], mid)
    s3, b3 = bn_fold(ks[8], ks[9], ks[10], ks[11], mid)
    w1 = 0.1 * jax.random.normal(ks[12], (in_c, mid), F32)          # 1x1: (Cin, Cmid)
    w2 = 0.1 * jax.random.normal(ks[13], (3, 3, mid, mid), F32)     # 3x3: (kh, kw, Cin, Cout)
    w3 = 0.1 * jax.random.normal(ks[14], (mid, out_c), F32)         # 1x1: (Cmid, Cout)
    wsc = 0.1 * jax.random.normal(ks[15], (in_c, out_c), F32)       # shortcut 1x1
    return dict(s1=s1, b1=b1, s2=s2, b2=b2, s3=s3, b3=b3,
                w1=w1, w2=w2, w3=w3, wsc=wsc)


# ----------------------------- pure-JAX reference -----------------------------

def ref_forward(x_nchw, p, stride):
    def conv(x, w, s, pad):
        return jax.lax.conv_general_dilated(
            x, w, (s, s), [(pad, pad), (pad, pad)],
            dimension_numbers=("NCHW", "OIHW", "NCHW"), precision=_HIGHEST)

    def bn(x, scale, bias):
        return x * scale.reshape(1, -1, 1, 1) + bias.reshape(1, -1, 1, 1)

    relu = lambda t: jnp.maximum(t, 0.0)
    Cin = x_nchw.shape[1]
    Cout = p["w3"].shape[1]
    same_shape = (Cin == Cout) and (stride == 1)

    w1 = jnp.transpose(p["w1"], (1, 0))[:, :, None, None]
    w2 = jnp.transpose(p["w2"], (3, 2, 0, 1))
    w3 = jnp.transpose(p["w3"], (1, 0))[:, :, None, None]

    out = conv(relu(bn(x_nchw, p["s1"], p["b1"])), w1, 1, 0)
    out = conv(relu(bn(out, p["s2"], p["b2"])), w2, stride, 1)
    out = conv(relu(bn(out, p["s3"], p["b3"])), w3, 1, 0)
    if same_shape:
        sc = x_nchw
    else:
        wsc = jnp.transpose(p["wsc"], (1, 0))[:, :, None, None]
        sc = conv(x_nchw, wsc, stride, 0)
    return out + sc


# ----------------------------- main -----------------------------

def _run_config(kx, kp, N, in_c, out_c, H, W, stride):
    x = jax.random.normal(kx, (N, in_c, H, W), F32)
    params = init_params(kp, in_c, out_c)

    b_tile = _pick_b_tile(N, H)
    packed = pack_params(params, H=H, W=W, stride=stride, b_tile=b_tile)   # one-time
    x_lane = to_lane_dense(x)                                              # one-time

    y_lane = jax.block_until_ready(bottleneck_forward(x_lane, packed))

    Ho = (H - 1) // stride + 1
    Wo = (W - 1) // stride + 1
    y = from_lane_dense(y_lane.astype(F32), N, Ho, Wo, out_c)
    y_ref = ref_forward(x, params, stride)
    np.testing.assert_allclose(np.asarray(y), np.asarray(y_ref), rtol=2e-2, atol=2e-2)


if __name__ == "__main__":
    key = jax.random.PRNGKey(0)
    kx, kp = jax.random.split(key)

    # Config A: projection shortcut (in != out, stride 2), use_bn=True, use_dropout=False.
    _run_config(kx, kp, N=2, in_c=8, out_c=16, H=16, W=16, stride=2)

    # Config B: identity shortcut (in == out, stride 1).
    _run_config(kx, kp, N=2, in_c=16, out_c=16, H=8, W=8, stride=1)

    print("KERNEL_OK")
</pallas_src>

<mosaic_0001>
module attributes {stable_mosaic.version = 11 : i64} {
  func.func @_bottleneck_kernel(%arg0: i32, %arg1: memref<32x128xbf16, #tpu.memory_space<vmem>>, %arg2: memref<1x128xf32, #tpu.memory_space<vmem>>, %arg3: memref<1x128xf32, #tpu.memory_space<vmem>>, %arg4: memref<128x64xbf16, #tpu.memory_space<vmem>>, %arg5: memref<1x64xf32, #tpu.memory_space<vmem>>, %arg6: memref<1x64xf32, #tpu.memory_space<vmem>>, %arg7: memref<3x64x32xbf16, #tpu.memory_space<vmem>>, %arg8: memref<3x16x32xbf16, #tpu.memory_space<vmem>>, %arg9: memref<1x32xf32, #tpu.memory_space<vmem>>, %arg10: memref<1x32xf32, #tpu.memory_space<vmem>>, %arg11: memref<32x128xbf16, #tpu.memory_space<vmem>>, %arg12: memref<128x128xbf16, #tpu.memory_space<vmem>>, %arg13: memref<16x128xbf16, #tpu.memory_space<vmem>>) attributes {dimension_semantics = [#tpu.dimension_semantics<parallel>], iteration_bounds = array<i64: 1>, scalar_prefetch = 0 : i64, scratch_operands = 0 : i64, tpu.core_type = #tpu.core_type<tc>, window_params = [{transform_indices = @transform_0, window_bounds = array<i64: 32, 128>}, {pipeline_mode = #tpu.pipeline_mode<synchronous>, transform_indices = @transform_1, window_bounds = array<i64: 1, 128>}, {pipeline_mode = #tpu.pipeline_mode<synchronous>, transform_indices = @transform_2, window_bounds = array<i64: 1, 128>}, {pipeline_mode = #tpu.pipeline_mode<synchronous>, transform_indices = @transform_3, window_bounds = array<i64: 128, 64>}, {pipeline_mode = #tpu.pipeline_mode<synchronous>, transform_indices = @transform_4, window_bounds = array<i64: 1, 64>}, {pipeline_mode = #tpu.pipeline_mode<synchronous>, transform_indices = @transform_5, window_bounds = array<i64: 1, 64>}, {pipeline_mode = #tpu.pipeline_mode<synchronous>, transform_indices = @transform_6, window_bounds = array<i64: 3, 64, 32>}, {pipeline_mode = #tpu.pipeline_mode<synchronous>, transform_indices = @transform_7, window_bounds = array<i64: 3, 16, 32>}, {pipeline_mode = #tpu.pipeline_mode<synchronous>, transform_indices = @transform_8, window_bounds = array<i64: 1, 32>}, {pipeline_mode = #tpu.pipeline_mode<synchronous>, transform_indices = @transform_9, window_bounds = array<i64: 1, 32>}, {pipeline_mode = #tpu.pipeline_mode<synchronous>, transform_indices = @transform_10, window_bounds = array<i64: 32, 128>}, {pipeline_mode = #tpu.pipeline_mode<synchronous>, transform_indices = @transform_11, window_bounds = array<i64: 128, 128>}, {transform_indices = @transform_12, window_bounds = array<i64: 16, 128>}]} {
    %c0 = arith.constant 0 : index
    %c0_0 = arith.constant 0 : index
    %0 = vector.load %arg1[%c0, %c0_0] : memref<32x128xbf16, #tpu.memory_space<vmem>>, vector<32x128xbf16>
    %1 = arith.extf %0 : vector<32x128xbf16> to vector<32x128xf32>
    %c0_1 = arith.constant 0 : index
    %c0_2 = arith.constant 0 : index
    %2 = vector.load %arg2[%c0_1, %c0_2] : memref<1x128xf32, #tpu.memory_space<vmem>>, vector<1x128xf32>
    %3 = vector.broadcast %2 : vector<1x128xf32> to vector<32x128xf32>
    %4 = arith.mulf %1, %3 : vector<32x128xf32>
    %c0_3 = arith.constant 0 : index
    %c0_4 = arith.constant 0 : index
    %5 = vector.load %arg3[%c0_3, %c0_4] : memref<1x128xf32, #tpu.memory_space<vmem>>, vector<1x128xf32>
    %6 = vector.broadcast %5 : vector<1x128xf32> to vector<32x128xf32>
    %7 = arith.addf %4, %6 : vector<32x128xf32>
    %cst = arith.constant 0.000000e+00 : f32
    %8 = vector.broadcast %cst : f32 to vector<32x128xf32>
    %9 = arith.maximumf %7, %8 : vector<32x128xf32>
    %10 = arith.truncf %9 : vector<32x128xf32> to vector<32x128xbf16>
    %c0_5 = arith.constant 0 : index
    %c0_6 = arith.constant 0 : index
    %11 = vector.load %arg4[%c0_5, %c0_6] : memref<128x64xbf16, #tpu.memory_space<vmem>>, vector<128x64xbf16>
    %cst_7 = arith.constant dense<0.000000e+00> : vector<32x64xf32>
    %12 = tpu.matmul %10, %11, %cst_7 {dimension_numbers = #tpu.dot_dimension_numbers<[1], [0], [0], [1], [0, 0, 1, 1], [], []>} : vector<32x128xbf16>, vector<128x64xbf16>, vector<32x64xf32> -> vector<32x64xf32>
    %c0_8 = arith.constant 0 : index
    %c0_9 = arith.constant 0 : index
    %13 = vector.load %arg5[%c0_8, %c0_9] : memref<1x64xf32, #tpu.memory_space<vmem>>, vector<1x64xf32>
    %14 = vector.broadcast %13 : vector<1x64xf32> to vector<32x64xf32>
    %15 = arith.mulf %12, %14 : vector<32x64xf32>
    %c0_10 = arith.constant 0 : index
    %c0_11 = arith.constant 0 : index
    %16 = vector.load %arg6[%c0_10, %c0_11] : memref<1x64xf32, #tpu.memory_space<vmem>>, vector<1x64xf32>
    %17 = vector.broadcast %16 : vector<1x64xf32> to vector<32x64xf32>
    %18 = arith.addf %15, %17 : vector<32x64xf32>
    %cst_12 = arith.constant 0.000000e+00 : f32
    %19 = vector.broadcast %cst_12 : f32 to vector<32x64xf32>
    %20 = arith.maximumf %18, %19 : vector<32x64xf32>
    %21 = arith.truncf %20 : vector<32x64xf32> to vector<32x64xbf16>
    %cst_13 = arith.constant 0.000000e+00 : f32
    %22 = vector.broadcast %cst_13 : f32 to vector<16x32xf32>
    %c0_14 = arith.constant 0 : index
    %c0_15 = arith.constant 0 : index
    %c0_16 = arith.constant 0 : index
    %23 = vector.load %arg8[%c0_14, %c0_15, %c0_16] : memref<3x16x32xbf16, #tpu.memory_space<vmem>>, vector<1x16x32xbf16>
    %24 = vector.shape_cast %23 : vector<1x16x32xbf16> to vector<16x32xbf16>
    %cst_17 = arith.constant dense<0.000000e+00> : vector<16x64xf32>
    %25 = tpu.matmul %24, %21, %cst_17 {dimension_numbers = #tpu.dot_dimension_numbers<[1], [0], [0], [1], [0, 0, 1, 1], [], []>} : vector<16x32xbf16>, vector<32x64xbf16>, vector<16x64xf32> -> vector<16x64xf32>
    %26 = arith.truncf %25 : vector<16x64xf32> to vector<16x64xbf16>
    %c0_18 = arith.constant 0 : index
    %c0_19 = arith.constant 0 : index
    %c0_20 = arith.constant 0 : index
    %27 = vector.load %arg7[%c0_18, %c0_19, %c0_20] : memref<3x64x32xbf16, #tpu.memory_space<vmem>>, vector<1x64x32xbf16>
    %28 = vector.shape_cast %27 : vector<1x64x32xbf16> to vector<64x32xbf16>
    %cst_21 = arith.constant dense<0.000000e+00> : vector<16x32xf32>
    %29 = tpu.matmul %26, %28, %cst_21 {dimension_numbers = #tpu.dot_dimension_numbers<[1], [0], [0], [1], [0, 0, 1, 1], [], []>} : vector<16x64xbf16>, vector<64x32xbf16>, vector<16x32xf32> -> vector<16x32xf32>
    %30 = arith.addf %22, %29 : vector<16x32xf32>
    %c1 = arith.constant 1 : index
    %c0_22 = arith.constant 0 : index
    %c0_23 = arith.constant 0 : index
    %31 = vector.load %arg8[%c1, %c0_22, %c0_23] : memref<3x16x32xbf16, #tpu.memory_space<vmem>>, vector<1x16x32xbf16>
    %32 = vector.shape_cast %31 : vector<1x16x32xbf16> to vector<16x32xbf16>
    %cst_24 = arith.constant dense<0.000000e+00> : vector<16x64xf32>
    %33 = tpu.matmul %32, %21, %cst_24 {dimension_numbers = #tpu.dot_dimension_numbers<[1], [0], [0], [1], [0, 0, 1, 1], [], []>} : vector<16x32xbf16>, vector<32x64xbf16>, vector<16x64xf32> -> vector<16x64xf32>
    %34 = arith.truncf %33 : vector<16x64xf32> to vector<16x64xbf16>
    %c1_25 = arith.constant 1 : index
    %c0_26 = arith.constant 0 : index
    %c0_27 = arith.constant 0 : index
    %35 = vector.load %arg7[%c1_25, %c0_26, %c0_27] : memref<3x64x32xbf16, #tpu.memory_space<vmem>>, vector<1x64x32xbf16>
    %36 = vector.shape_cast %35 : vector<1x64x32xbf16> to vector<64x32xbf16>
    %cst_28 = arith.constant dense<0.000000e+00> : vector<16x32xf32>
    %37 = tpu.matmul %34, %36, %cst_28 {dimension_numbers = #tpu.dot_dimension_numbers<[1], [0], [0], [1], [0, 0, 1, 1], [], []>} : vector<16x64xbf16>, vector<64x32xbf16>, vector<16x32xf32> -> vector<16x32xf32>
    %38 = arith.addf %30, %37 : vector<16x32xf32>
    %c2 = arith.constant 2 : index
    %c0_29 = arith.constant 0 : index
    %c0_30 = arith.constant 0 : index
    %39 = vector.load %arg8[%c2, %c0_29, %c0_30] : memref<3x16x32xbf16, #tpu.memory_space<vmem>>, vector<1x16x32xbf16>
    %40 = vector.shape_cast %39 : vector<1x16x32xbf16> to vector<16x32xbf16>
    %cst_31 = arith.constant dense<0.000000e+00> : vector<16x64xf32>
    %41 = tpu.matmul %40, %21, %cst_31 {dimension_numbers = #tpu.dot_dimension_numbers<[1], [0], [0], [1], [0, 0, 1, 1], [], []>} : vector<16x32xbf16>, vector<32x64xbf16>, vector<16x64xf32> -> vector<16x64xf32>
    %42 = arith.truncf %41 : vector<16x64xf32> to vector<16x64xbf16>
    %c2_32 = arith.constant 2 : index
    %c0_33 = arith.constant 0 : index
    %c0_34 = arith.constant 0 : index
    %43 = vector.load %arg7[%c2_32, %c0_33, %c0_34] : memref<3x64x32xbf16, #tpu.memory_space<vmem>>, vector<1x64x32xbf16>
    %44 = vector.shape_cast %43 : vector<1x64x32xbf16> to vector<64x32xbf16>
    %cst_35 = arith.constant dense<0.000000e+00> : vector<16x32xf32>
    %45 = tpu.matmul %42, %44, %cst_35 {dimension_numbers = #tpu.dot_dimension_numbers<[1], [0], [0], [1], [0, 0, 1, 1], [], []>} : vector<16x64xbf16>, vector<64x32xbf16>, vector<16x32xf32> -> vector<16x32xf32>
    %46 = arith.addf %38, %45 : vector<16x32xf32>
    %c0_36 = arith.constant 0 : index
    %c0_37 = arith.constant 0 : index
    %47 = vector.load %arg9[%c0_36, %c0_37] : memref<1x32xf32, #tpu.memory_space<vmem>>, vector<1x32xf32>
    %48 = vector.broadcast %47 : vector<1x32xf32> to vector<16x32xf32>
    %49 = arith.mulf %46, %48 : vector<16x32xf32>
    %c0_38 = arith.constant 0 : index
    %c0_39 = arith.constant 0 : index
    %50 = vector.load %arg10[%c0_38, %c0_39] : memref<1x32xf32, #tpu.memory_space<vmem>>, vector<1x32xf32>
    %51 = vector.broadcast %50 : vector<1x32xf32> to vector<16x32xf32>
    %52 = arith.addf %49, %51 : vector<16x32xf32>
    %cst_40 = arith.constant 0.000000e+00 : f32
    %53 = vector.broadcast %cst_40 : f32 to vector<16x32xf32>
    %54 = arith.maximumf %52, %53 : vector<16x32xf32>
    %55 = arith.truncf %54 : vector<16x32xf32> to vector<16x32xbf16>
    %c0_41 = arith.constant 0 : index
    %c0_42 = arith.constant 0 : index
    %56 = vector.load %arg11[%c0_41, %c0_42] : memref<32x128xbf16, #tpu.memory_space<vmem>>, vector<32x128xbf16>
    %cst_43 = arith.constant dense<0.000000e+00> : vector<16x128xf32>
    %57 = tpu.matmul %55, %56, %cst_43 {dimension_numbers = #tpu.dot_dimension_numbers<[1], [0], [0], [1], [0, 0, 1, 1], [], []>} : vector<16x32xbf16>, vector<32x128xbf16>, vector<16x128xf32> -> vector<16x128xf32>
    %c1_44 = arith.constant 1 : index
    %c0_45 = arith.constant 0 : index
    %c0_46 = arith.constant 0 : index
    %58 = vector.load %arg8[%c1_44, %c0_45, %c0_46] : memref<3x16x32xbf16, #tpu.memory_space<vmem>>, vector<1x16x32xbf16>
    %59 = vector.shape_cast %58 : vector<1x16x32xbf16> to vector<16x32xbf16>
    %cst_47 = arith.constant dense<0.000000e+00> : vector<16x128xf32>
    %60 = tpu.matmul %59, %0, %cst_47 {dimension_numbers = #tpu.dot_dimension_numbers<[1], [0], [0], [1], [0, 0, 1, 1], [], []>} : vector<16x32xbf16>, vector<32x128xbf16>, vector<16x128xf32> -> vector<16x128xf32>
    %61 = arith.truncf %60 : vector<16x128xf32> to vector<16x128xbf16>
    %c0_48 = arith.constant 0 : index
    %c0_49 = arith.constant 0 : index
    %62 = vector.load %arg12[%c0_48, %c0_49] : memref<128x128xbf16, #tpu.memory_space<vmem>>, vector<128x128xbf16>
    %cst_50 = arith.constant dense<0.000000e+00> : vector<16x128xf32>
    %63 = tpu.matmul %61, %62, %cst_50 {dimension_numbers = #tpu.dot_dimension_numbers<[1], [0], [0], [1], [0, 0, 1, 1], [], []>} : vector<16x128xbf16>, vector<128x128xbf16>, vector<16x128xf32> -> vector<16x128xf32>
    %64 = arith.addf %57, %63 : vector<16x128xf32>
    %65 = arith.truncf %64 : vector<16x128xf32> to vector<16x128xbf16>
    %c0_51 = arith.constant 0 : index
    %c0_52 = arith.constant 0 : index
    %66 = vector.load %arg13[%c0_51, %c0_52] : memref<16x128xbf16, #tpu.memory_space<vmem>>, vector<16x128xbf16>
    tpu.vector_store %arg13[%c0_51, %c0_52], %65 {strides = array<i32>} : memref<16x128xbf16, #tpu.memory_space<vmem>>, vector<16x128xbf16>,
    return
  }
  func.func @transform_0(%arg0: i32) -> (i32, i32) {
    %c0_i32 = arith.constant 0 : i32
    %c0_i32_0 = arith.constant 0 : i32
    return %arg0, %c0_i32 : i32, i32
  }
  func.func @transform_1(%arg0: i32) -> (i32, i32) {
    %c0_i32 = arith.constant 0 : i32
    %c0_i32_0 = arith.constant 0 : i32
    %c0_i32_1 = arith.constant 0 : i32
    return %c0_i32, %c0_i32_0 : i32, i32
  }
  func.func @transform_2(%arg0: i32) -> (i32, i32) {
    %c0_i32 = arith.constant 0 : i32
    %c0_i32_0 = arith.constant 0 : i32
    %c0_i32_1 = arith.constant 0 : i32
    return %c0_i32, %c0_i32_0 : i32, i32
  }
  func.func @transform_3(%arg0: i32) -> (i32, i32) {
    %c0_i32 = arith.constant 0 : i32
    %c0_i32_0 = arith.constant 0 : i32
    %c0_i32_1 = arith.constant 0 : i32
    return %c0_i32, %c0_i32_0 : i32, i32
  }
  func.func @transform_4(%arg0: i32) -> (i32, i32) {
    %c0_i32 = arith.constant 0 : i32
    %c0_i32_0 = arith.constant 0 : i32
    %c0_i32_1 = arith.constant 0 : i32
    return %c0_i32, %c0_i32_0 : i32, i32
  }
  func.func @transform_5(%arg0: i32) -> (i32, i32) {
    %c0_i32 = arith.constant 0 : i32
    %c0_i32_0 = arith.constant 0 : i32
    %c0_i32_1 = arith.constant 0 : i32
    return %c0_i32, %c0_i32_0 : i32, i32
  }
  func.func @transform_6(%arg0: i32) -> (i32, i32, i32) {
    %c0_i32 = arith.constant 0 : i32
    %c0_i32_0 = arith.constant 0 : i32
    %c0_i32_1 = arith.constant 0 : i32
    %c0_i32_2 = arith.constant 0 : i32
    return %c0_i32, %c0_i32_0, %c0_i32_1 : i32, i32, i32
  }
  func.func @transform_7(%arg0: i32) -> (i32, i32, i32) {
    %c0_i32 = arith.constant 0 : i32
    %c0_i32_0 = arith.constant 0 : i32
    %c0_i32_1 = arith.constant 0 : i32
    %c0_i32_2 = arith.constant 0 : i32
    return %c0_i32, %c0_i32_0, %c0_i32_1 : i32, i32, i32
  }
  func.func @transform_8(%arg0: i32) -> (i32, i32) {
    %c0_i32 = arith.constant 0 : i32
    %c0_i32_0 = arith.constant 0 : i32
    %c0_i32_1 = arith.constant 0 : i32
    return %c0_i32, %c0_i32_0 : i32, i32
  }
  func.func @transform_9(%arg0: i32) -> (i32, i32) {
    %c0_i32 = arith.constant 0 : i32
    %c0_i32_0 = arith.constant 0 : i32
    %c0_i32_1 = arith.constant 0 : i32
    return %c0_i32, %c0_i32_0 : i32, i32
  }
  func.func @transform_10(%arg0: i32) -> (i32, i32) {
    %c0_i32 = arith.constant 0 : i32
    %c0_i32_0 = arith.constant 0 : i32
    %c0_i32_1 = arith.constant 0 : i32
    return %c0_i32, %c0_i32_0 : i32, i32
  }
  func.func @transform_11(%arg0: i32) -> (i32, i32) {
    %c0_i32 = arith.constant 0 : i32
    %c0_i32_0 = arith.constant 0 : i32
    %c0_i32_1 = arith.constant 0 : i32
    return %c0_i32, %c0_i32_0 : i32, i32
  }
  func.func @transform_12(%arg0: i32) -> (i32, i32) {
    %c0_i32 = arith.constant 0 : i32
    %c0_i32_0 = arith.constant 0 : i32
    return %arg0, %c0_i32 : i32, i32
  }
}

</mosaic_0001>

<bundles_post_ra>
// kernel: bottleneck_forward.1
= control target key start
LH: loop header
LB: loop body
LE: loop exit
PB: predicated region body
PF: predicated region fallthrough
CT: control target
= control target key end

     0   :  { %s1475_s0 = inlined_call_operand.vmem [shape: bf16[32,128], index: 0, kind: input, shape index: {}]   ;;  %s1476_s1 = inlined_call_operand.vmem [shape: f32[1,128], index: 1, kind: input, shape index: {}]   ;;  %s1477_s2 = inlined_call_operand.vmem [shape: f32[1,128], index: 2, kind: input, shape index: {}]   ;;  %s1478_s3 = inlined_call_operand.vmem [shape: bf16[128,64], index: 3, kind: input, shape index: {}]   ;;  %s1479_s4 = inlined_call_operand.vmem [shape: f32[1,64], index: 4, kind: input, shape index: {}]   ;;  %s1480_s5 = inlined_call_operand.vmem [shape: f32[1,64], index: 5, kind: input, shape index: {}]   ;;  %s1481_s6 = inlined_call_operand.vmem [shape: bf16[3,64,32], index: 6, kind: input, shape index: {}]   ;;  %s1482_s7 = inlined_call_operand.vmem [shape: bf16[3,16,32], index: 7, kind: input, shape index: {}]   ;;  %s1483_s8 = inlined_call_operand.vmem [shape: f32[1,32], index: 8, kind: input, shape index: {}]   ;;  %s1484_s9 = inlined_call_operand.vmem [shape: f32[1,32], index: 9, kind: input, shape index: {}]   ;;  %s1485_s10 = inlined_call_operand.vmem [shape: bf16[32,128], index: 10, kind: input, shape index: {}]   ;;  %s1486_s11 = inlined_call_operand.vmem [shape: bf16[128,128], index: 11, kind: input, shape index: {}]   ;;  %s1487_s12 = inlined_call_operand.hbm [shape: bf16[16,128], index: 12, kind: output, shape index: {}]  }
   0x1   :  { %v1138_v0 = vld [vmem:[%s1478_s3] sm:$0xff]   ;;  %v1139_v1 = vld [vmem:[%s1478_s3 + $0x8] sm:$0xff]   ;;  %v1140_v2 = vld [vmem:[%s1478_s3 + $0x10] sm:$0xff]  }
   0x2   :  { %1005 = vmatprep.subr.bf16.mxu0 %v1138_v0  ;;  %v1141_v3 = vld [vmem:[%s1478_s3 + $0x18] sm:$0xff]   ;;  %v1284_v4 = vld [vmem:[%s1475_s0] sm:$0xff]   ;;  %v1297_v9 = vld [vmem:[%s1475_s0 + $0x8] sm:$0xff]  }
   0x3   :  { %1006 = vmatpush3.bf16.msra.mxu0 %v1138_v0  ;;  %v878_v5 = vld [vmem:[%s1476_s1] ss:$0 sm:$0xff]  ;;  %v47_v7 = vunpack.c.l.bf16 %v1284_v4  ;;  %v48_v8 = vunpack.c.h.bf16 %v1284_v4  ;;  %v49_v11 = vunpack.c.l.bf16 %v1297_v9  ;;  %v50_v12 = vunpack.c.h.bf16 %v1297_v9  ;;  %v1143_v19 = vld [vmem:[%s1478_s3 + $0x28] sm:$0xff]   ;;  %v1144_v27 = vld [vmem:[%s1478_s3 + $0x30] sm:$0xff]  }
   0x4   :  { %1007 = vmatprep.subr.bf16.mxu0 %v1139_v1  ;;  %v879_v6 = vld [vmem:[%s1477_s2] ss:$0 sm:$0xff]  ;;  %v1145_v28 = vld [vmem:[%s1478_s3 + $0x38] sm:$0xff]  }
   0x5   :  { %v1142_v10 = vld [vmem:[%s1478_s3 + $0x20] sm:$0xff]   ;;  %v58_v13 = vmul.f32 %v878_v5, %v47_v7  ;;  %v59_v14 = vmul.f32 %v878_v5, %v48_v8  ;;  %v60_v15 = vmul.f32 %v878_v5, %v49_v11  ;;  %v61_v16 = vmul.f32 %v878_v5, %v50_v12 }
   0x7   :  { %1008 = vmatpush3.bf16.msra.mxu0 %v1139_v1  ;;  %v69_v17 = vadd.f32 %v879_v6, %v58_v13  ;;  %v70_v18 = vadd.f32 %v879_v6, %v59_v14  ;;  %v71_v20 = vadd.f32 %v879_v6, %v60_v15  ;;  %v72_v21 = vadd.f32 %v879_v6, %v61_v16 }
   0x8   :  { %1009 = vmatprep.subr.bf16.mxu0 %v1140_v2 }
   0x9   :  { %v73_v22 = vmax.f32 %v69_v17, 0.0  ;;  %v74_v23 = vmax.f32 %v70_v18, 0.0  ;;  %v75_v24 = vmax.f32 %v71_v20, 0.0  ;;  %v76_v25 = vmax.f32 %v72_v21, 0.0 }
   0xb   :  { %1010 = vmatpush3.bf16.msra.mxu0 %v1140_v2  ;;  %v77_v26 = vpack.c.bf16 %v74_v23, %v73_v22 }
   0xc   :  { %1011 = vmatprep.subr.bf16.mxu0 %v1141_v3 }
   0xd   :  { %1021 = vmatprep.mubr.bf16.mxu0 %v77_v26 }
   0xf   :  { %1012 = vmatpush3.bf16.msra.mxu0 %v1141_v3 }
  0x10   :  { %1013 = vmatprep.subr.bf16.mxu0 %v1142_v10 }
  0x13   :  { %1014 = vmatpush3.bf16.msra.mxu0 %v1142_v10 }
  0x14   :  { %1015 = vmatprep.subr.bf16.mxu0 %v1143_v19 }
  0x17   :  { %1016 = vmatpush3.bf16.msra.mxu0 %v1143_v19 }
  0x18   :  { %1017 = vmatprep.subr.bf16.mxu0 %v1144_v27 }
  0x19   :  { %17 = vsyncpa [#allocation3], 0  ;;  %v78_v29 = vpack.c.bf16 %v76_v25, %v75_v24  ;;  %v1199_v30 = vmov 0.0   ;;  %vm1200_vm0 = vmmov 0   ;;  %v888_v31 = vld [vmem:[%s1479_s4] ss:$0 sm:$0xff] }
  0x1a   :  { %1025 = vmatprep.subr.bf16.mxu1 %v1199_v30  ;;  %1029 = vmatprep.mubr.msk.bf16.mxu1 %vm1200_vm0, %v1199_v30  ;;  %v889_v33 = vld [vmem:[%s1480_s5] ss:$0 sm:$0xff]  ;;  %vm227_vm1 = vcmask 261120   ;;  %v1147_v52 = vld [vmem:[%s1482_s7 + $0x8] sm:$0xff]   ;;  %v1150_v55 = vld [vmem:[%s1481_s6 + $0x30] sm:$0xff]   ;;  %vm367_vm2 = vcmask 523264  }
  0x1b   :  { %1018 = vmatpush3.bf16.msra.mxu0 %v1144_v27  ;;  %v1146_v51 = vld [vmem:[%s1482_s7] sm:$0xff]   ;;  %v1149_v54 = vld [vmem:[%s1481_s6 + $0x28] sm:$0xff]   ;;  %v1151_v56 = vld [vmem:[%s1481_s6 + $0x38] sm:$0xff]  }
  0x1c   :  { %1019 = vmatprep.subr.bf16.mxu0 %v1145_v28  ;;  %v1148_v53 = vld [vmem:[%s1481_s6 + $0x20] sm:$0xff]   ;;  %v1154_v5 = vld [vmem:[%s1481_s6 + $0x10] sm:$0xff]   ;;  %v1155_v6 = vld [vmem:[%s1481_s6 + $0x18] sm:$0xff]  }
  0x1d   :  { %v1152_v1 = vld [vmem:[%s1481_s6] sm:$0xff]   ;;  %v1156_v7 = vld [vmem:[%s1482_s7 + $0x10] sm:$0xff]   ;;  %v1162_v11 = vld [vmem:[%s1481_s6 + $0x58] sm:$0xff]  }
  0x1e   :  { %v1157_v8 = vld [vmem:[%s1481_s6 + $0x40] sm:$0xff]   ;;  %v1161_v10 = vld [vmem:[%s1481_s6 + $0x50] sm:$0xff]   ;;  %v1164_v13 = vld [vmem:[%s1486_s11 + $0x8] sm:$0xff]  }
  0x1f   :  { %1020 = vmatpush3.bf16.msra.mxu0 %v1145_v28  ;;  %v1163_v12 = vld [vmem:[%s1486_s11] sm:$0xff]   ;;  %v1165_v15 = vld [vmem:[%s1486_s11 + $0x10] sm:$0xff]   ;;  %v1166_v20 = vld [vmem:[%s1486_s11 + $0x18] sm:$0xff]  }
  0x20   :  { %1085 = vmatprep.subr.bf16.mxu0 %v1199_v30  ;;  %v1167_v21 = vld [vmem:[%s1486_s11 + $0x20] sm:$0xff]   ;;  %v1168_v22 = vld [vmem:[%s1486_s11 + $0x28] sm:$0xff]   ;;  %v1169_v23 = vld [vmem:[%s1486_s11 + $0x30] sm:$0xff]  }
  0x21   :  { %v1170_v24 = vld [vmem:[%s1486_s11 + $0x38] sm:$0xff]  }
  0x22   :  { %1022 = vmatmul.mubr.bf16.vlgmr.msra.gmra.mrb[0].mxu0 %v78_v29 }
  0x23   :  { %1089 = vmatprep.mubr.msk.bf16.mxu0 %vm1200_vm0, %v1199_v30  ;;  %1086 = vmatpush3.bf16.msra.mxu0 %v1284_v4  ;;  %v1153_v4 = vld [vmem:[%s1481_s6 + $0x8] sm:$0xff]  }
  0x24   :  { %1087 = vmatprep.subr.bf16.mxu0 %v1199_v30 }
  0x27   :  { %1088 = vmatpush3.bf16.msra.mxu0 %v1297_v9  ;;  %v1159_v9 = vld [vmem:[%s1481_s6 + $0x48] sm:$0xff]  }
  0x28   :  { %1093 = vmatprep.subr.bf16.mxu0 %v1199_v30 }
  0x2a   :  { %1090 = vmatmul.mubr.msk.bf16.vlgmr.msra.gmra.mrb[4].mxu0 %vm227_vm1, %v1147_v52 }
  0x2b   :  { %1109 = vmatprep.mubr.msk.bf16.mxu0 %vm1200_vm0, %v1199_v30  ;;  %1094 = vmatpush3.bf16.msra.mxu0 %v1163_v12 }
  0x2c   :  { %1095 = vmatprep.subr.bf16.mxu0 %v1199_v30 }
  0x2f   :  { %1096 = vmatpush3.bf16.msra.mxu0 %v1164_v13 }
  0x30   :  { %1097 = vmatprep.subr.bf16.mxu0 %v1199_v30 }
  0x33   :  { %1098 = vmatpush3.bf16.msra.mxu0 %v1165_v15 }
  0x34   :  { %1099 = vmatprep.subr.bf16.mxu0 %v1199_v30 }
  0x37   :  { %1100 = vmatpush3.bf16.msra.mxu0 %v1166_v20 }
  0x38   :  { %1101 = vmatprep.subr.bf16.mxu0 %v1199_v30 }
  0x3b   :  { %1102 = vmatpush3.bf16.msra.mxu0 %v1167_v21 }
  0x3c   :  { %1103 = vmatprep.subr.bf16.mxu0 %v1199_v30 }
  0x3f   :  { %1104 = vmatpush3.bf16.msra.mxu0 %v1168_v22 }
  0x40   :  { %1105 = vmatprep.subr.bf16.mxu0 %v1199_v30 }
  0x43   :  { %1106 = vmatpush3.bf16.msra.mxu0 %v1169_v23 }
  0x44   :  { %1107 = vmatprep.subr.bf16.mxu0 %v1199_v30 }
  0x47   :  { %1108 = vmatpush3.bf16.msra.mxu0 %v1170_v24 }
  0x48   :  { %1113 = vmatprep.subr.bf16.mxu0 %v1199_v30 }
  0xf5   :  { %v1023_v32 = vpop.f32.mrb[0].mxu0 }
  0xf6   :  { %v201_v34 = vmul.f32 %v1023_v32, %v888_v31  ;;  %v177_v35 = vpop.f32.mrb[1].mxu0  ;;  %v1172_v32 = vld [vmem:[%s1485_s10 + $0x8] sm:$0xff]  }
  0xf7   :  { %v199_v36 = vmul.f32 %v888_v31, %v177_v35  ;;  %v1024_v37 = vpop.f32.mrb[2].mxu0  ;;  %v932_v35 = vld [vmem:[%s1484_s9] ss:$0 sm:$0xff] }
  0xf8   :  { %v212_v38 = vadd.f32 %v889_v33, %v201_v34  ;;  %v202_v39 = vmul.f32 %v1024_v37, %v888_v31  ;;  %v180_v40 = vpop.f32.mrb[3].mxu0 }
  0xf9   :  { %v210_v41 = vadd.f32 %v889_v33, %v199_v36  ;;  %v200_v42 = vmul.f32 %v888_v31, %v180_v40  ;;  %v1171_v31 = vld [vmem:[%s1485_s10] sm:$0xff]   ;;  %s1201_s10 = smov [#allocation2]  }
  0xfa   :  { %v213_v43 = vadd.f32 %v889_v33, %v202_v39  ;;  %v216_v45 = vmax.f32 %v212_v38, 0.0  ;;  %s867_s27 = sshll.u32 %s1201_s10, 4  ;;  %s868_s27 = int_to_ptr.vmem [resolvable:$true] %s867_s27 }
  0xfb   :  { %v211_v44 = vadd.f32 %v889_v33, %v200_v42  ;;  %v214_v47 = vmax.f32 %v210_v41, 0.0  ;;  %v931_v33 = vld [vmem:[%s1483_s8] ss:$0 sm:$0xff]  ;;  %s1175_s8 = scalar_lea.vmem %s868_s27, 128  ;;  %p1180_p1 = scmp.lt.s32.totalorder %s868_s27, %s868_s27 }
  0xfc   :  { %v217_v46 = vmax.f32 %v213_v43, 0.0  ;;  %p1176_p0 = scmp.ne.s32.totalorder %s868_s27, %s1175_s8  ;;  %p1181_p2 = scmp.lt.s32.totalorder %s1175_s8, %s1175_s8 }
  0xfd   :  { %v215_v48 = vmax.f32 %v211_v44, 0.0  ;;  %v683_v14 = vpop.f32.mrb[4].mxu0 }
  0xfe   :  { %v1325_v49 = vpack.c.bf16 %v217_v46, %v216_v45  ;;  %v1091_v16 = vpop.f32.mrb[5].mxu0  ;;  %p1182_p3 = por %p1181_p2, %p1180_p1 }
  0xff   :  { %v218_v50 = vpack.c.bf16 %v215_v48, %v214_v47  ;;  %v686_v17 = vpop.f32.mrb[6].mxu0 }
 0x100   :  { %v690_v18 = vpack.c.bf16 %v686_v17, %v683_v14  ;;  %v1092_v19 = vpop.f32.mrb[7].mxu0  ;;  %p1183_p4 = pnand %p1182_p3, %p1176_p0 }
 0x101   :  { %1026 = vmatpush3.bf16.msra.mxu1 %v218_v50 }
 0x102   :  { %1027 = vmatprep.subr.bf16.mxu1 %v1199_v30  ;;  %1110 = vmatmul.mubr.bf16.vlgmr.msra.gmra.mrb[8].mxu0 %v690_v18 }
 0x103   :  { %1117 = vmatprep.mubr.msk.bf16.mxu0 %vm1200_vm0, %v1199_v30  ;;  %1114 = vmatpush3.bf16.msra.mxu0 %v1171_v31 }
 0x104   :  { %1115 = vmatprep.subr.bf16.mxu0 %v1199_v30 }
 0x105   :  { %1028 = vmatpush3.bf16.msra.mxu1 %v1325_v49 }
 0x106   :  { %1033 = vmatprep.subr.bf16.mxu1 %v1199_v30 }
 0x107   :  { %1116 = vmatpush3.bf16.msra.mxu0 %v1172_v32 }
 0x108   :  { %1030 = vmatmul.mubr.msk.bf16.vlgmr.msra.gmra.mrb[0].mxu1 %vm227_vm1, %v1146_v51 }
 0x109   :  { %1034 = vmatpush3.bf16.msra.mxu1 %v218_v50  ;;  %1037 = vmatprep.mubr.msk.bf16.mxu1 %vm1200_vm0, %v1199_v30 }
 0x10a   :  { %1035 = vmatprep.subr.bf16.mxu1 %v1199_v30 }
 0x10d   :  { %1036 = vmatpush3.bf16.msra.mxu1 %v1325_v49 }
 0x10e   :  { %1041 = vmatprep.subr.bf16.mxu1 %v1199_v30 }
 0x110   :  { %1038 = vmatmul.mubr.msk.bf16.vlgmr.msra.gmra.mrb[4].mxu1 %vm227_vm1, %v1147_v52 }
 0x111   :  { %1042 = vmatpush3.bf16.msra.mxu1 %v1148_v53  ;;  %1049 = vmatprep.mubr.msk.bf16.mxu1 %vm1200_vm0, %v1199_v30 }
 0x112   :  { %1043 = vmatprep.subr.bf16.mxu1 %v1199_v30 }
 0x115   :  { %1044 = vmatpush3.bf16.msra.mxu1 %v1149_v54 }
 0x116   :  { %1045 = vmatprep.subr.bf16.mxu1 %v1199_v30 }
 0x119   :  { %1046 = vmatpush3.bf16.msra.mxu1 %v1150_v55 }
 0x11a   :  { %1047 = vmatprep.subr.bf16.mxu1 %v1199_v30 }
 0x11d   :  { %1048 = vmatpush3.bf16.msra.mxu1 %v1151_v56 }
 0x11e   :  { %1053 = vmatprep.subr.bf16.mxu1 %v1199_v30 }
 0x1db   :  { %v265_v57 = vpop.f32.mrb[0].mxu1 }
 0x1dc   :  { %v1031_v58 = vpop.f32.mrb[1].mxu1 }
 0x1dd   :  { %v268_v59 = vpop.f32.mrb[2].mxu1 }
 0x1de   :  { %v272_v60 = vpack.c.bf16 %v268_v59, %v265_v57  ;;  %v1032_v61 = vpop.f32.mrb[3].mxu1 }
 0x1e3   :  { %v326_v62 = vpop.f32.mrb[4].mxu1 }
 0x1e4   :  { %v1039_v63 = vpop.f32.mrb[5].mxu1 }
 0x1e5   :  { %v329_v0 = vpop.f32.mrb[6].mxu1 }
 0x1e6   :  { %v333_v2 = vpack.c.bf16 %v329_v0, %v326_v62  ;;  %v1040_v3 = vpop.f32.mrb[7].mxu1 }
 0x1e8   :  { %1050 = vmatmul.mubr.msk.bf16.vlgmr.msra.gmra.mrb[8].mxu1 %vm367_vm2, %v333_v2 }
 0x1e9   :  { %1054 = vmatpush3.bf16.msra.mxu1 %v1152_v1  ;;  %1061 = vmatprep.mubr.msk.bf16.mxu1 %vm1200_vm0, %v1199_v30 }
 0x1ea   :  { %1055 = vmatprep.subr.bf16.mxu1 %v1199_v30 }
 0x1ed   :  { %1056 = vmatpush3.bf16.msra.mxu1 %v1153_v4 }
 0x1ee   :  { %1057 = vmatprep.subr.bf16.mxu1 %v1199_v30 }
 0x1f1   :  { %1058 = vmatpush3.bf16.msra.mxu1 %v1154_v5 }
 0x1f2   :  { %1059 = vmatprep.subr.bf16.mxu1 %v1199_v30 }
 0x1f5   :  { %1060 = vmatpush3.bf16.msra.mxu1 %v1155_v6 }
 0x1f6   :  { %1065 = vmatprep.subr.bf16.mxu1 %v1199_v30 }
 0x1f8   :  { %1062 = vmatmul.mubr.msk.bf16.vlgmr.msra.gmra.mrb[8].mxu1 %vm367_vm2, %v272_v60 }
 0x1f9   :  { %1066 = vmatpush3.bf16.msra.mxu1 %v218_v50  ;;  %1069 = vmatprep.mubr.msk.bf16.mxu1 %vm1200_vm0, %v1199_v30 }
 0x1fa   :  { %1067 = vmatprep.subr.bf16.mxu1 %v1199_v30 }
 0x1fd   :  { %1068 = vmatpush3.bf16.msra.mxu1 %v1325_v49 }
 0x1fe   :  { %1073 = vmatprep.subr.bf16.mxu1 %v1199_v30 }
 0x200   :  { %1070 = vmatmul.mubr.msk.bf16.vlgmr.msra.gmra.mrb[12].mxu1 %vm227_vm1, %v1156_v7 }
 0x201   :  { %1074 = vmatpush3.bf16.msra.mxu1 %v1157_v8  ;;  %1081 = vmatprep.mubr.msk.bf16.mxu1 %vm1200_vm0, %v1199_v30 }
 0x202   :  { %1075 = vmatprep.subr.bf16.mxu1 %v1199_v30 }
 0x205   :  { %1076 = vmatpush3.bf16.msra.mxu1 %v1159_v9 }
 0x206   :  { %1077 = vmatprep.subr.bf16.mxu1 %v1199_v30 }
 0x209   :  { %1078 = vmatpush3.bf16.msra.mxu1 %v1161_v10 }
 0x20a   :  { %1079 = vmatprep.subr.bf16.mxu1 %v1199_v30 }
 0x20d   :  { %1080 = vmatpush3.bf16.msra.mxu1 %v1162_v11 }
 0x2d3   :  { %v525_v25 = vpop.f32.mrb[12].mxu1 }
 0x2d4   :  { %v1071_v26 = vpop.f32.mrb[13].mxu1 }
 0x2d5   :  { %v528_v27 = vpop.f32.mrb[14].mxu1 }
 0x2d6   :  { %v532_v28 = vpack.c.bf16 %v528_v27, %v525_v25  ;;  %v1072_v29 = vpop.f32.mrb[15].mxu1 }
 0x2d8   :  { %1082 = vmatmul.mubr.msk.bf16.vlgmr.msra.gmra.mrb[8].mxu1 %vm367_vm2, %v532_v28 }
 0x3ab   :  { %v603_v34 = vpop.f32.mrb[8].mxu1 }
 0x3ac   :  { %v619_v36 = vmul.f32 %v931_v33, %v603_v34  ;;  %v1083_v37 = vpop.f32.mrb[9].mxu1 }
 0x3ad   :  { %v606_v38 = vpop.f32.mrb[10].mxu1 }
 0x3ae   :  { %v628_v39 = vadd.f32 %v932_v35, %v619_v36  ;;  %v620_v40 = vmul.f32 %v931_v33, %v606_v38  ;;  %v1084_v30 = vpop.f32.mrb[11].mxu1 }
 0x3b0   :  { %v629_v41 = vadd.f32 %v932_v35, %v620_v40  ;;  %v630_v42 = vmax.f32 %v628_v39, 0.0 }
 0x3b2   :  { %v631_v43 = vmax.f32 %v629_v41, 0.0 }
 0x3b4   :  { %v632_v44 = vpack.c.bf16 %v631_v43, %v630_v42 }
 0x3b6   :  { %1118 = vmatmul.mubr.msk.bf16.vlgmr.msra.gmra.mrb[8].mxu0 %vm227_vm1, %v632_v44 }
 0x489   :  { %v845_v45 = vpop.f32.mrb[8].mxu0 }
 0x48a   :  { %v1119_v46 = vpop.f32.mrb[9].mxu0 }
 0x48b   :  { %v848_v47 = vpop.f32.mrb[10].mxu0 }
 0x48c   :  { %v954_v48 = vpack.c.bf16 %v848_v47, %v845_v45  ;;  %v1120_v49 = vpop.f32.mrb[11].mxu0 }
 0x48e   :  { %955 = vst [vmem:[#allocation2] sm:$0xff] %v954_v48  }
 0x48f   :  { %1186 = shalt.err (!%p1183_p4)
}
 0x490   :  { %s1187_s29 = scalar_lea.hbm %s1487_s12, 128 }
 0x491   :  { %p1188_p5 = scmp.ne.s32.totalorder %s1487_s12, %s1187_s29  ;;  %p1191_p6 = scmp.lt.u32.totalorder %s1187_s29, %s1487_s12 }
 0x493   :  { %p1193_p7 = pnand %p1191_p6, %p1188_p5 }
 0x495   :  { %1196 = shalt.err (!%p1193_p7)
}
 0x496   :  { %s1202_s16 = smov 64   ;;  %s1203_s17 = smov 4  }
 0x497   :  { %873 = dma.vmem_to_hbm [thread:$0]  %s868_s27, 128, %s1487_s12, [#allocation3], %s1202_s16, %s1202_s16, %s1203_s17  }
 0x498   :  { %1197 = dma.done.wait [#allocation3], 128  }
 0x499   :  { %1198 = vsyncadd [#allocation3], 4294967168 }
 0x49a   :  { %877 = vsyncpa [#allocation3], 1 }

</bundles_post_ra>
